<compile_context>
chip_gen: v5e
topology: v5e:2x2
jax: 0.10.0
libtpu: 0.0.40
codegen_flags: <defaults>
</compile_context>

<pallas_src>
import functools
from typing import NamedTuple

import jax
import jax.numpy as jnp
import numpy as np
from jax import lax
from jax.experimental import pallas as pl
from jax.experimental.pallas import tpu as pltpu


# Tap order of the 3x3 kernel: (dy, dx), row-major.  Must match the weight
# packing and the mask packing in pack_block_params.
_OFFSETS = tuple((dy, dx) for dy in (-1, 0, 1) for dx in (-1, 0, 1))


class BlockCfg(NamedTuple):
    num_units: int
    c_max: int     # padded channel count of the resident activation
    cm_pad: int    # padded mid-channel count (multiple of 8)
    c_in: int
    c_out: int
    N: int
    H: int
    W: int
    L: int         # N*H*W (lane axis)
    mask_rows: int
    unit_rows: int


def _round_up(x, m):
    return (x + m - 1) // m * m


def _block_kernel(x_ref, blob_ref, o_ref, patches_ref, *, cfg: BlockCfg):
    """x_ref: (c_max, L) activations, channel rows >= real C are zero.
    blob_ref: packed constants (masks + per-unit weights/biases), see
              pack_block_params for the row layout.  All offsets static.
    o_ref:   (c_max, L) output.
    patches_ref: (9*cm_pad, L) VMEM scratch for the 3x3 im2col stack.
    """
    cm = cfg.cm_pad
    c_max = cfg.c_max
    L = cfg.L
    W = cfg.W

    a = x_ref[...]                                       # (c_max, L)
    for u in range(cfg.num_units):
        base = cfg.mask_rows + u * cfg.unit_rows

        # First ReLU is inplace in the PyTorch module, so the residual branch
        # also sees relu(x).
        h0 = jnp.maximum(a, 0.0)                         # (c_max, L)

        # 1x1 conv (in -> mid) + bias + ReLU.
        w1 = blob_ref[base:base + cm, :c_max]            # (cm, c_max)
        b1 = blob_ref[base + cm:base + 2 * cm, :L]       # (cm, L) pre-broadcast
        h1 = jnp.dot(w1, h0, preferred_element_type=jnp.float32)
        h1 = jnp.maximum(h1 + b1, 0.0)                   # (cm, L)

        # 3x3 conv, stride 1, SAME: 8 lane rolls (XLU) + boundary masks,
        # stored into an 8-aligned VMEM scratch, then ONE matmul K = 9*cm.
        for k, (dy, dx) in enumerate(_OFFSETS):
            dst = slice(k * cm, (k + 1) * cm)
            if dy == 0 and dx == 0:
                patches_ref[dst, :] = h1
            else:
                s = dy * W + dx                          # lane shift of this tap
                rolled = pltpu.roll(h1, (-s) % L, 1)
                patches_ref[dst, :] = rolled * blob_ref[dst, :L]

        w2 = blob_ref[base + 2 * cm:base + 3 * cm, :9 * cm]   # (cm, 9*cm)
        b2 = blob_ref[base + 3 * cm:base + 4 * cm, :L]        # (cm, L)
        h2 = jnp.dot(w2, patches_ref[...], preferred_element_type=jnp.float32)
        h2 = jnp.maximum(h2 + b2, 0.0)                   # (cm, L)

        # 1x1 conv (mid -> out), output rows already padded to c_max.
        w3 = blob_ref[base + 4 * cm:base + 4 * cm + c_max, :cm]          # (c_max, cm)
        b3 = blob_ref[base + 4 * cm + c_max:base + 4 * cm + 2 * c_max, :L]
        h3 = jnp.dot(w3, h2, preferred_element_type=jnp.float32) + b3    # (c_max, L)

        # Residual: rows >= cin of h0 are zero and rows >= cout of h3 are zero,
        # so the channel-zero-pad residual is a plain full-width add.
        a = h3 + h0

    o_ref[...] = a


def pack_block_params(all_params, c0, N, H, W):
    """Pack masks + all unit parameters into one (rows, >=128) f32 blob.

    Done ONCE at init with numpy (outside any jit).  Blob row layout:
      rows [0, 9*cm_pad)          : 3x3 tap validity masks, each tap's 0/1 mask
                                    pre-broadcast over cm_pad sublanes.
      per unit u at base = 9*cm_pad + u*unit_rows:
        [base            , +cm_pad) : w1.T   (cm, c_max)   cols [0, c_max)
        [base +   cm_pad , +cm_pad) : b1     pre-broadcast  cols [0, L)
        [base + 2*cm_pad , +cm_pad) : w2 tap-packed (cm, 9*cm_pad)
        [base + 3*cm_pad , +cm_pad) : b2     pre-broadcast  cols [0, L)
        [base + 4*cm_pad , +c_max)  : w3.T   (cout, cm)    cols [0, cm_pad)
        [base + 4*cm_pad + c_max, +c_max) : b3 pre-broadcast cols [0, L)
    All padded rows / columns are exactly zero (keeps padded activation rows
    zero through the whole block).
    """
    L = N * H * W
    nu = len(all_params)
    oc = all_params[-1][4].shape[1]
    c_max = _round_up(max(c0, max(int(p[4].shape[1]) for p in all_params)), 8)
    cm_pad = _round_up(max(int(p[0].shape[1]) for p in all_params), 8)
    cols = max(L, 9 * cm_pad, c_max, 128)
    mask_rows = 9 * cm_pad
    unit_rows = 4 * cm_pad + 2 * c_max
    tot_rows = _round_up(mask_rows + nu * unit_rows, 8)

    blob = np.zeros((tot_rows, cols), np.float32)

    # --- 3x3 tap validity masks, pre-broadcast over cm_pad sublanes ---
    lane = np.arange(L)
    yy = (lane % (H * W)) // W
    xx = lane % W
    for k, (dy, dx) in enumerate(_OFFSETS):
        ok = ((yy + dy >= 0) & (yy + dy < H) &
              (xx + dx >= 0) & (xx + dx < W)).astype(np.float32)
        blob[k * cm_pad:(k + 1) * cm_pad, :L] = ok[None, :]

    # --- per-unit weights / biases ---
    for u, (w1, b1, w2, b2, w3, b3) in enumerate(all_params):
        w1 = np.asarray(w1); b1 = np.asarray(b1)
        w2 = np.asarray(w2); b2 = np.asarray(b2)
        w3 = np.asarray(w3); b3 = np.asarray(b3)
        cin, cmid = w1.shape
        cout = w3.shape[1]
        assert cout >= cin, "units must not shrink the channel count"
        base = mask_rows + u * unit_rows

        blob[base:base + cmid, :cin] = w1.T                             # (cm, c_max)
        blob[base + cm_pad:base + cm_pad + cmid, :L] = b1[:, None]      # b1 bcast
        r = base + 2 * cm_pad
        for k in range(9):                                              # w2 taps
            ky, kx = divmod(k, 3)
            blob[r:r + cmid, k * cm_pad:k * cm_pad + cmid] = w2[ky, kx].T
        blob[base + 3 * cm_pad:base + 3 * cm_pad + cmid, :L] = b2[:, None]
        r = base + 4 * cm_pad
        blob[r:r + cout, :cmid] = w3.T                                  # (c_max, cm)
        r = base + 4 * cm_pad + c_max
        blob[r:r + cout, :L] = b3[:, None]                              # b3 bcast

    cfg = BlockCfg(num_units=nu, c_max=c_max, cm_pad=cm_pad, c_in=c0, c_out=oc,
                   N=N, H=H, W=W, L=L, mask_rows=mask_rows, unit_rows=unit_rows)
    return jnp.asarray(blob), cfg


def residual_bottleneck_block_packed(x_cl, blob, cfg: BlockCfg):
    """Forward in the kernel-native (c_max, N*H*W) layout (for chaining blocks)."""
    return pl.pallas_call(
        functools.partial(_block_kernel, cfg=cfg),
        out_shape=jax.ShapeDtypeStruct((cfg.c_max, cfg.L), jnp.float32),
        scratch_shapes=[pltpu.VMEM((9 * cfg.cm_pad, cfg.L), jnp.float32)],
    )(x_cl, blob)


def residual_bottleneck_block(x_nchw, blob, cfg: BlockCfg):
    """ResidualBottleneckBlock forward.  x_nchw: (N, C, H, W) float32 (PyTorch layout)."""
    N, c0, H, W = x_nchw.shape
    L = N * H * W
    assert (N, H, W, L) == (cfg.N, cfg.H, cfg.W, cfg.L) and c0 == cfg.c_in
    # NCHW -> (C, N*H*W) with zero-padded channel rows (no NHWC transposes).
    x_cl = jnp.transpose(x_nchw, (1, 0, 2, 3)).reshape(c0, L)
    x_cl = jnp.pad(x_cl, ((0, cfg.c_max - c0), (0, 0)))
    out_cl = residual_bottleneck_block_packed(x_cl, blob, cfg)
    # (c_max, N*H*W) -> (N, oc, H, W)
    return jnp.transpose(out_cl[:cfg.c_out].reshape(cfg.c_out, N, H, W),
                         (1, 0, 2, 3))


def init_block_params(key, ic, oc, fr, nu):
    """Deterministic synthetic parameters matching the module's __init__ shapes."""
    assert (oc - ic) % nu == 0
    s = (oc - ic) // nu
    assert ic % fr == 0 and s % fr == 0
    params = []
    for cin in range(ic, oc, s):
        cm = cin // fr
        cout = cin + s
        key, k1, k2, k3, k4, k5, k6 = jax.random.split(key, 7)
        scale = 0.1
        w1 = scale * jax.random.normal(k1, (cin, cm), jnp.float32)       # 1x1 conv
        b1 = scale * jax.random.normal(k2, (cm,), jnp.float32)
        w2 = scale * jax.random.normal(k3, (3, 3, cm, cm), jnp.float32)  # 3x3 HWIO
        b2 = scale * jax.random.normal(k4, (cm,), jnp.float32)
        w3 = scale * jax.random.normal(k5, (cm, cout), jnp.float32)      # 1x1 conv
        b3 = scale * jax.random.normal(k6, (cout,), jnp.float32)
        params.append((w1, b1, w2, b2, w3, b3))
    return params


# ---- pure-JAX reference (for correctness check only) ----
def _ref_unit(x_nhwc, params):
    w1, b1, w2, b2, w3, b3 = params
    h0 = jnp.maximum(x_nhwc, 0.0)
    h1 = jnp.maximum(jnp.einsum('nhwc,cd->nhwd', h0, w1) + b1, 0.0)
    h2 = lax.conv_general_dilated(h1, w2, (1, 1), 'SAME',
                                  dimension_numbers=('NHWC', 'HWIO', 'NHWC')) + b2
    h2 = jnp.maximum(h2, 0.0)
    h3 = jnp.einsum('nhwc,cd->nhwd', h2, w3) + b3
    pad = h3.shape[-1] - x_nhwc.shape[-1]
    r = jnp.pad(h0, ((0, 0), (0, 0), (0, 0), (0, pad)))
    return h3 + r


def _ref_block(x_nchw, all_params):
    x = jnp.transpose(x_nchw, (0, 2, 3, 1))
    for p in all_params:
        x = _ref_unit(x, p)
    return jnp.transpose(x, (0, 3, 1, 2))


if __name__ == "__main__":
    # ResidualBottleneckBlock(ic=8, oc=16, fr=2, nu=2)
    #   -> units: (in=8, mid=4, out=12), (in=12, mid=6, out=16)
    ic, oc, fr, nu = 8, 16, 2, 2
    N, H, W = 2, 8, 8          # N*H*W = 128 -> exactly one full lane width

    key = jax.random.PRNGKey(0)
    kx, kp = jax.random.split(key)
    x = jax.random.normal(kx, (N, ic, H, W), jnp.float32)   # NCHW like PyTorch
    params = init_block_params(kp, ic, oc, fr, nu)

    # Pack ONCE at init (numpy, outside jit): single constant blob + static cfg.
    blob, cfg = pack_block_params(params, ic, N, H, W)

    block = jax.jit(residual_bottleneck_block, static_argnums=2)
    out = jax.block_until_ready(block(x, blob, cfg))
    assert out.shape == (N, oc, H, W)

    ref = _ref_block(x, params)
    np.testing.assert_allclose(np.asarray(out), np.asarray(ref),
                               rtol=1e-3, atol=1e-3)
    print("KERNEL_OK")
</pallas_src>

<mosaic_0001>
module attributes {stable_mosaic.version = 11 : i64} {
  func.func @_block_kernel(%arg0: memref<16x128xf32, #tpu.memory_space<vmem>>, %arg1: memref<200x128xf32, #tpu.memory_space<vmem>>, %arg2: memref<16x128xf32, #tpu.memory_space<vmem>>, %arg3: memref<72x128xf32, #tpu.memory_space<vmem>>) attributes {dimension_semantics = [], scalar_prefetch = 0 : i64, scratch_operands = 1 : i64, tpu.core_type = #tpu.core_type<tc>} {
    %c0 = arith.constant 0 : index
    %c0_0 = arith.constant 0 : index
    %0 = vector.load %arg0[%c0, %c0_0] : memref<16x128xf32, #tpu.memory_space<vmem>>, vector<16x128xf32>
    %cst = arith.constant 0.000000e+00 : f32
    %1 = vector.broadcast %cst : f32 to vector<16x128xf32>
    %2 = arith.maximumf %0, %1 : vector<16x128xf32>
    %c72 = arith.constant 72 : index
    %c0_1 = arith.constant 0 : index
    %3 = vector.load %arg1[%c72, %c0_1] : memref<200x128xf32, #tpu.memory_space<vmem>>, vector<8x16xf32>
    %c80 = arith.constant 80 : index
    %c0_2 = arith.constant 0 : index
    %4 = vector.load %arg1[%c80, %c0_2] : memref<200x128xf32, #tpu.memory_space<vmem>>, vector<8x128xf32>
    %cst_3 = arith.constant dense<0.000000e+00> : vector<8x128xf32>
    %5 = tpu.matmul %3, %2, %cst_3 {dimension_numbers = #tpu.dot_dimension_numbers<[1], [0], [0], [1], [0, 0, 1, 1], [], []>} : vector<8x16xf32>, vector<16x128xf32>, vector<8x128xf32> -> vector<8x128xf32>
    %6 = arith.addf %5, %4 : vector<8x128xf32>
    %cst_4 = arith.constant 0.000000e+00 : f32
    %7 = vector.broadcast %cst_4 : f32 to vector<8x128xf32>
    %8 = arith.maximumf %6, %7 : vector<8x128xf32>
    %c9_i32 = arith.constant 9 : i32
    %9 = tpu.dynamic_rotate %8 by %c9_i32 dim 1 : vector<8x128xf32>, i32 -> vector<8x128xf32>
    %c0_5 = arith.constant 0 : index
    %c0_6 = arith.constant 0 : index
    %10 = vector.load %arg1[%c0_5, %c0_6] : memref<200x128xf32, #tpu.memory_space<vmem>>, vector<8x128xf32>
    %11 = arith.mulf %9, %10 : vector<8x128xf32>
    %c0_7 = arith.constant 0 : index
    %c0_8 = arith.constant 0 : index
    %12 = vector.load %arg3[%c0_7, %c0_8] : memref<72x128xf32, #tpu.memory_space<vmem>>, vector<8x128xf32>
    tpu.vector_store %arg3[%c0_7, %c0_8], %11 {strides = array<i32>} : memref<72x128xf32, #tpu.memory_space<vmem>>, vector<8x128xf32>,
    %c8_i32 = arith.constant 8 : i32
    %13 = tpu.dynamic_rotate %8 by %c8_i32 dim 1 : vector<8x128xf32>, i32 -> vector<8x128xf32>
    %c8 = arith.constant 8 : index
    %c0_9 = arith.constant 0 : index
    %14 = vector.load %arg1[%c8, %c0_9] : memref<200x128xf32, #tpu.memory_space<vmem>>, vector<8x128xf32>
    %15 = arith.mulf %13, %14 : vector<8x128xf32>
    %c8_10 = arith.constant 8 : index
    %c0_11 = arith.constant 0 : index
    %16 = vector.load %arg3[%c8_10, %c0_11] : memref<72x128xf32, #tpu.memory_space<vmem>>, vector<8x128xf32>
    tpu.vector_store %arg3[%c8_10, %c0_11], %15 {strides = array<i32>} : memref<72x128xf32, #tpu.memory_space<vmem>>, vector<8x128xf32>,
    %c7_i32 = arith.constant 7 : i32
    %17 = tpu.dynamic_rotate %8 by %c7_i32 dim 1 : vector<8x128xf32>, i32 -> vector<8x128xf32>
    %c16 = arith.constant 16 : index
    %c0_12 = arith.constant 0 : index
    %18 = vector.load %arg1[%c16, %c0_12] : memref<200x128xf32, #tpu.memory_space<vmem>>, vector<8x128xf32>
    %19 = arith.mulf %17, %18 : vector<8x128xf32>
    %c16_13 = arith.constant 16 : index
    %c0_14 = arith.constant 0 : index
    %20 = vector.load %arg3[%c16_13, %c0_14] : memref<72x128xf32, #tpu.memory_space<vmem>>, vector<8x128xf32>
    tpu.vector_store %arg3[%c16_13, %c0_14], %19 {strides = array<i32>} : memref<72x128xf32, #tpu.memory_space<vmem>>, vector<8x128xf32>,
    %c1_i32 = arith.constant 1 : i32
    %21 = tpu.dynamic_rotate %8 by %c1_i32 dim 1 : vector<8x128xf32>, i32 -> vector<8x128xf32>
    %c24 = arith.constant 24 : index
    %c0_15 = arith.constant 0 : index
    %22 = vector.load %arg1[%c24, %c0_15] : memref<200x128xf32, #tpu.memory_space<vmem>>, vector<8x128xf32>
    %23 = arith.mulf %21, %22 : vector<8x128xf32>
    %c24_16 = arith.constant 24 : index
    %c0_17 = arith.constant 0 : index
    %24 = vector.load %arg3[%c24_16, %c0_17] : memref<72x128xf32, #tpu.memory_space<vmem>>, vector<8x128xf32>
    tpu.vector_store %arg3[%c24_16, %c0_17], %23 {strides = array<i32>} : memref<72x128xf32, #tpu.memory_space<vmem>>, vector<8x128xf32>,
    %c32 = arith.constant 32 : index
    %c0_18 = arith.constant 0 : index
    %25 = vector.load %arg3[%c32, %c0_18] : memref<72x128xf32, #tpu.memory_space<vmem>>, vector<8x128xf32>
    tpu.vector_store %arg3[%c32, %c0_18], %8 {strides = array<i32>} : memref<72x128xf32, #tpu.memory_space<vmem>>, vector<8x128xf32>,
    %c127_i32 = arith.constant 127 : i32
    %26 = tpu.dynamic_rotate %8 by %c127_i32 dim 1 : vector<8x128xf32>, i32 -> vector<8x128xf32>
    %c40 = arith.constant 40 : index
    %c0_19 = arith.constant 0 : index
    %27 = vector.load %arg1[%c40, %c0_19] : memref<200x128xf32, #tpu.memory_space<vmem>>, vector<8x128xf32>
    %28 = arith.mulf %26, %27 : vector<8x128xf32>
    %c40_20 = arith.constant 40 : index
    %c0_21 = arith.constant 0 : index
    %29 = vector.load %arg3[%c40_20, %c0_21] : memref<72x128xf32, #tpu.memory_space<vmem>>, vector<8x128xf32>
    tpu.vector_store %arg3[%c40_20, %c0_21], %28 {strides = array<i32>} : memref<72x128xf32, #tpu.memory_space<vmem>>, vector<8x128xf32>,
    %c121_i32 = arith.constant 121 : i32
    %30 = tpu.dynamic_rotate %8 by %c121_i32 dim 1 : vector<8x128xf32>, i32 -> vector<8x128xf32>
    %c48 = arith.constant 48 : index
    %c0_22 = arith.constant 0 : index
    %31 = vector.load %arg1[%c48, %c0_22] : memref<200x128xf32, #tpu.memory_space<vmem>>, vector<8x128xf32>
    %32 = arith.mulf %30, %31 : vector<8x128xf32>
    %c48_23 = arith.constant 48 : index
    %c0_24 = arith.constant 0 : index
    %33 = vector.load %arg3[%c48_23, %c0_24] : memref<72x128xf32, #tpu.memory_space<vmem>>, vector<8x128xf32>
    tpu.vector_store %arg3[%c48_23, %c0_24], %32 {strides = array<i32>} : memref<72x128xf32, #tpu.memory_space<vmem>>, vector<8x128xf32>,
    %c120_i32 = arith.constant 120 : i32
    %34 = tpu.dynamic_rotate %8 by %c120_i32 dim 1 : vector<8x128xf32>, i32 -> vector<8x128xf32>
    %c56 = arith.constant 56 : index
    %c0_25 = arith.constant 0 : index
    %35 = vector.load %arg1[%c56, %c0_25] : memref<200x128xf32, #tpu.memory_space<vmem>>, vector<8x128xf32>
    %36 = arith.mulf %34, %35 : vector<8x128xf32>
    %c56_26 = arith.constant 56 : index
    %c0_27 = arith.constant 0 : index
    %37 = vector.load %arg3[%c56_26, %c0_27] : memref<72x128xf32, #tpu.memory_space<vmem>>, vector<8x128xf32>
    tpu.vector_store %arg3[%c56_26, %c0_27], %36 {strides = array<i32>} : memref<72x128xf32, #tpu.memory_space<vmem>>, vector<8x128xf32>,
    %c119_i32 = arith.constant 119 : i32
    %38 = tpu.dynamic_rotate %8 by %c119_i32 dim 1 : vector<8x128xf32>, i32 -> vector<8x128xf32>
    %c64 = arith.constant 64 : index
    %c0_28 = arith.constant 0 : index
    %39 = vector.load %arg1[%c64, %c0_28] : memref<200x128xf32, #tpu.memory_space<vmem>>, vector<8x128xf32>
    %40 = arith.mulf %38, %39 : vector<8x128xf32>
    %c64_29 = arith.constant 64 : index
    %c0_30 = arith.constant 0 : index
    %41 = vector.load %arg3[%c64_29, %c0_30] : memref<72x128xf32, #tpu.memory_space<vmem>>, vector<8x128xf32>
    tpu.vector_store %arg3[%c64_29, %c0_30], %40 {strides = array<i32>} : memref<72x128xf32, #tpu.memory_space<vmem>>, vector<8x128xf32>,
    %c88 = arith.constant 88 : index
    %c0_31 = arith.constant 0 : index
    %42 = vector.load %arg1[%c88, %c0_31] : memref<200x128xf32, #tpu.memory_space<vmem>>, vector<8x72xf32>
    %c96 = arith.constant 96 : index
    %c0_32 = arith.constant 0 : index
    %43 = vector.load %arg1[%c96, %c0_32] : memref<200x128xf32, #tpu.memory_space<vmem>>, vector<8x128xf32>
    %c0_33 = arith.constant 0 : index
    %c0_34 = arith.constant 0 : index
    %44 = vector.load %arg3[%c0_33, %c0_34] : memref<72x128xf32, #tpu.memory_space<vmem>>, vector<72x128xf32>
    %cst_35 = arith.constant dense<0.000000e+00> : vector<8x128xf32>
    %45 = tpu.matmul %42, %44, %cst_35 {dimension_numbers = #tpu.dot_dimension_numbers<[1], [0], [0], [1], [0, 0, 1, 1], [], []>} : vector<8x72xf32>, vector<72x128xf32>, vector<8x128xf32> -> vector<8x128xf32>
    %46 = arith.addf %45, %43 : vector<8x128xf32>
    %cst_36 = arith.constant 0.000000e+00 : f32
    %47 = vector.broadcast %cst_36 : f32 to vector<8x128xf32>
    %48 = arith.maximumf %46, %47 : vector<8x128xf32>
    %c104 = arith.constant 104 : index
    %c0_37 = arith.constant 0 : index
    %49 = vector.load %arg1[%c104, %c0_37] : memref<200x128xf32, #tpu.memory_space<vmem>>, vector<16x8xf32>
    %c120 = arith.constant 120 : index
    %c0_38 = arith.constant 0 : index
    %50 = vector.load %arg1[%c120, %c0_38] : memref<200x128xf32, #tpu.memory_space<vmem>>, vector<16x128xf32>
    %cst_39 = arith.constant dense<0.000000e+00> : vector<16x128xf32>
    %51 = tpu.matmul %49, %48, %cst_39 {dimension_numbers = #tpu.dot_dimension_numbers<[1], [0], [0], [1], [0, 0, 1, 1], [], []>} : vector<16x8xf32>, vector<8x128xf32>, vector<16x128xf32> -> vector<16x128xf32>
    %52 = arith.addf %51, %50 : vector<16x128xf32>
    %53 = arith.addf %52, %2 : vector<16x128xf32>
    %cst_40 = arith.constant 0.000000e+00 : f32
    %54 = vector.broadcast %cst_40 : f32 to vector<16x128xf32>
    %55 = arith.maximumf %53, %54 : vector<16x128xf32>
    %c136 = arith.constant 136 : index
    %c0_41 = arith.constant 0 : index
    %56 = vector.load %arg1[%c136, %c0_41] : memref<200x128xf32, #tpu.memory_space<vmem>>, vector<8x16xf32>
    %c144 = arith.constant 144 : index
    %c0_42 = arith.constant 0 : index
    %57 = vector.load %arg1[%c144, %c0_42] : memref<200x128xf32, #tpu.memory_space<vmem>>, vector<8x128xf32>
    %cst_43 = arith.constant dense<0.000000e+00> : vector<8x128xf32>
    %58 = tpu.matmul %56, %55, %cst_43 {dimension_numbers = #tpu.dot_dimension_numbers<[1], [0], [0], [1], [0, 0, 1, 1], [], []>} : vector<8x16xf32>, vector<16x128xf32>, vector<8x128xf32> -> vector<8x128xf32>
    %59 = arith.addf %58, %57 : vector<8x128xf32>
    %cst_44 = arith.constant 0.000000e+00 : f32
    %60 = vector.broadcast %cst_44 : f32 to vector<8x128xf32>
    %61 = arith.maximumf %59, %60 : vector<8x128xf32>
    %c9_i32_45 = arith.constant 9 : i32
    %62 = tpu.dynamic_rotate %61 by %c9_i32_45 dim 1 : vector<8x128xf32>, i32 -> vector<8x128xf32>
    %c0_46 = arith.constant 0 : index
    %c0_47 = arith.constant 0 : index
    %63 = vector.load %arg1[%c0_46, %c0_47] : memref<200x128xf32, #tpu.memory_space<vmem>>, vector<8x128xf32>
    %64 = arith.mulf %62, %63 : vector<8x128xf32>
    %c0_48 = arith.constant 0 : index
    %c0_49 = arith.constant 0 : index
    %65 = vector.load %arg3[%c0_48, %c0_49] : memref<72x128xf32, #tpu.memory_space<vmem>>, vector<8x128xf32>
    tpu.vector_store %arg3[%c0_48, %c0_49], %64 {strides = array<i32>} : memref<72x128xf32, #tpu.memory_space<vmem>>, vector<8x128xf32>,
    %c8_i32_50 = arith.constant 8 : i32
    %66 = tpu.dynamic_rotate %61 by %c8_i32_50 dim 1 : vector<8x128xf32>, i32 -> vector<8x128xf32>
    %c8_51 = arith.constant 8 : index
    %c0_52 = arith.constant 0 : index
    %67 = vector.load %arg1[%c8_51, %c0_52] : memref<200x128xf32, #tpu.memory_space<vmem>>, vector<8x128xf32>
    %68 = arith.mulf %66, %67 : vector<8x128xf32>
    %c8_53 = arith.constant 8 : index
    %c0_54 = arith.constant 0 : index
    %69 = vector.load %arg3[%c8_53, %c0_54] : memref<72x128xf32, #tpu.memory_space<vmem>>, vector<8x128xf32>
    tpu.vector_store %arg3[%c8_53, %c0_54], %68 {strides = array<i32>} : memref<72x128xf32, #tpu.memory_space<vmem>>, vector<8x128xf32>,
    %c7_i32_55 = arith.constant 7 : i32
    %70 = tpu.dynamic_rotate %61 by %c7_i32_55 dim 1 : vector<8x128xf32>, i32 -> vector<8x128xf32>
    %c16_56 = arith.constant 16 : index
    %c0_57 = arith.constant 0 : index
    %71 = vector.load %arg1[%c16_56, %c0_57] : memref<200x128xf32, #tpu.memory_space<vmem>>, vector<8x128xf32>
    %72 = arith.mulf %70, %71 : vector<8x128xf32>
    %c16_58 = arith.constant 16 : index
    %c0_59 = arith.constant 0 : index
    %73 = vector.load %arg3[%c16_58, %c0_59] : memref<72x128xf32, #tpu.memory_space<vmem>>, vector<8x128xf32>
    tpu.vector_store %arg3[%c16_58, %c0_59], %72 {strides = array<i32>} : memref<72x128xf32, #tpu.memory_space<vmem>>, vector<8x128xf32>,
    %c1_i32_60 = arith.constant 1 : i32
    %74 = tpu.dynamic_rotate %61 by %c1_i32_60 dim 1 : vector<8x128xf32>, i32 -> vector<8x128xf32>
    %c24_61 = arith.constant 24 : index
    %c0_62 = arith.constant 0 : index
    %75 = vector.load %arg1[%c24_61, %c0_62] : memref<200x128xf32, #tpu.memory_space<vmem>>, vector<8x128xf32>
    %76 = arith.mulf %74, %75 : vector<8x128xf32>
    %c24_63 = arith.constant 24 : index
    %c0_64 = arith.constant 0 : index
    %77 = vector.load %arg3[%c24_63, %c0_64] : memref<72x128xf32, #tpu.memory_space<vmem>>, vector<8x128xf32>
    tpu.vector_store %arg3[%c24_63, %c0_64], %76 {strides = array<i32>} : memref<72x128xf32, #tpu.memory_space<vmem>>, vector<8x128xf32>,
    %c32_65 = arith.constant 32 : index
    %c0_66 = arith.constant 0 : index
    %78 = vector.load %arg3[%c32_65, %c0_66] : memref<72x128xf32, #tpu.memory_space<vmem>>, vector<8x128xf32>
    tpu.vector_store %arg3[%c32_65, %c0_66], %61 {strides = array<i32>} : memref<72x128xf32, #tpu.memory_space<vmem>>, vector<8x128xf32>,
    %c127_i32_67 = arith.constant 127 : i32
    %79 = tpu.dynamic_rotate %61 by %c127_i32_67 dim 1 : vector<8x128xf32>, i32 -> vector<8x128xf32>
    %c40_68 = arith.constant 40 : index
    %c0_69 = arith.constant 0 : index
    %80 = vector.load %arg1[%c40_68, %c0_69] : memref<200x128xf32, #tpu.memory_space<vmem>>, vector<8x128xf32>
    %81 = arith.mulf %79, %80 : vector<8x128xf32>
    %c40_70 = arith.constant 40 : index
    %c0_71 = arith.constant 0 : index
    %82 = vector.load %arg3[%c40_70, %c0_71] : memref<72x128xf32, #tpu.memory_space<vmem>>, vector<8x128xf32>
    tpu.vector_store %arg3[%c40_70, %c0_71], %81 {strides = array<i32>} : memref<72x128xf32, #tpu.memory_space<vmem>>, vector<8x128xf32>,
    %c121_i32_72 = arith.constant 121 : i32
    %83 = tpu.dynamic_rotate %61 by %c121_i32_72 dim 1 : vector<8x128xf32>, i32 -> vector<8x128xf32>
    %c48_73 = arith.constant 48 : index
    %c0_74 = arith.constant 0 : index
    %84 = vector.load %arg1[%c48_73, %c0_74] : memref<200x128xf32, #tpu.memory_space<vmem>>, vector<8x128xf32>
    %85 = arith.mulf %83, %84 : vector<8x128xf32>
    %c48_75 = arith.constant 48 : index
    %c0_76 = arith.constant 0 : index
    %86 = vector.load %arg3[%c48_75, %c0_76] : memref<72x128xf32, #tpu.memory_space<vmem>>, vector<8x128xf32>
    tpu.vector_store %arg3[%c48_75, %c0_76], %85 {strides = array<i32>} : memref<72x128xf32, #tpu.memory_space<vmem>>, vector<8x128xf32>,
    %c120_i32_77 = arith.constant 120 : i32
    %87 = tpu.dynamic_rotate %61 by %c120_i32_77 dim 1 : vector<8x128xf32>, i32 -> vector<8x128xf32>
    %c56_78 = arith.constant 56 : index
    %c0_79 = arith.constant 0 : index
    %88 = vector.load %arg1[%c56_78, %c0_79] : memref<200x128xf32, #tpu.memory_space<vmem>>, vector<8x128xf32>
    %89 = arith.mulf %87, %88 : vector<8x128xf32>
    %c56_80 = arith.constant 56 : index
    %c0_81 = arith.constant 0 : index
    %90 = vector.load %arg3[%c56_80, %c0_81] : memref<72x128xf32, #tpu.memory_space<vmem>>, vector<8x128xf32>
    tpu.vector_store %arg3[%c56_80, %c0_81], %89 {strides = array<i32>} : memref<72x128xf32, #tpu.memory_space<vmem>>, vector<8x128xf32>,
    %c119_i32_82 = arith.constant 119 : i32
    %91 = tpu.dynamic_rotate %61 by %c119_i32_82 dim 1 : vector<8x128xf32>, i32 -> vector<8x128xf32>
    %c64_83 = arith.constant 64 : index
    %c0_84 = arith.constant 0 : index
    %92 = vector.load %arg1[%c64_83, %c0_84] : memref<200x128xf32, #tpu.memory_space<vmem>>, vector<8x128xf32>
    %93 = arith.mulf %91, %92 : vector<8x128xf32>
    %c64_85 = arith.constant 64 : index
    %c0_86 = arith.constant 0 : index
    %94 = vector.load %arg3[%c64_85, %c0_86] : memref<72x128xf32, #tpu.memory_space<vmem>>, vector<8x128xf32>
    tpu.vector_store %arg3[%c64_85, %c0_86], %93 {strides = array<i32>} : memref<72x128xf32, #tpu.memory_space<vmem>>, vector<8x128xf32>,
    %c152 = arith.constant 152 : index
    %c0_87 = arith.constant 0 : index
    %95 = vector.load %arg1[%c152, %c0_87] : memref<200x128xf32, #tpu.memory_space<vmem>>, vector<8x72xf32>
    %c160 = arith.constant 160 : index
    %c0_88 = arith.constant 0 : index
    %96 = vector.load %arg1[%c160, %c0_88] : memref<200x128xf32, #tpu.memory_space<vmem>>, vector<8x128xf32>
    %c0_89 = arith.constant 0 : index
    %c0_90 = arith.constant 0 : index
    %97 = vector.load %arg3[%c0_89, %c0_90] : memref<72x128xf32, #tpu.memory_space<vmem>>, vector<72x128xf32>
    %cst_91 = arith.constant dense<0.000000e+00> : vector<8x128xf32>
    %98 = tpu.matmul %95, %97, %cst_91 {dimension_numbers = #tpu.dot_dimension_numbers<[1], [0], [0], [1], [0, 0, 1, 1], [], []>} : vector<8x72xf32>, vector<72x128xf32>, vector<8x128xf32> -> vector<8x128xf32>
    %99 = arith.addf %98, %96 : vector<8x128xf32>
    %cst_92 = arith.constant 0.000000e+00 : f32
    %100 = vector.broadcast %cst_92 : f32 to vector<8x128xf32>
    %101 = arith.maximumf %99, %100 : vector<8x128xf32>
    %c168 = arith.constant 168 : index
    %c0_93 = arith.constant 0 : index
    %102 = vector.load %arg1[%c168, %c0_93] : memref<200x128xf32, #tpu.memory_space<vmem>>, vector<16x8xf32>
    %c184 = arith.constant 184 : index
    %c0_94 = arith.constant 0 : index
    %103 = vector.load %arg1[%c184, %c0_94] : memref<200x128xf32, #tpu.memory_space<vmem>>, vector<16x128xf32>
    %cst_95 = arith.constant dense<0.000000e+00> : vector<16x128xf32>
    %104 = tpu.matmul %102, %101, %cst_95 {dimension_numbers = #tpu.dot_dimension_numbers<[1], [0], [0], [1], [0, 0, 1, 1], [], []>} : vector<16x8xf32>, vector<8x128xf32>, vector<16x128xf32> -> vector<16x128xf32>
    %105 = arith.addf %104, %103 : vector<16x128xf32>
    %106 = arith.addf %105, %55 : vector<16x128xf32>
    %c0_96 = arith.constant 0 : index
    %c0_97 = arith.constant 0 : index
    %107 = vector.load %arg2[%c0_96, %c0_97] : memref<16x128xf32, #tpu.memory_space<vmem>>, vector<16x128xf32>
    tpu.vector_store %arg2[%c0_96, %c0_97], %106 {strides = array<i32>} : memref<16x128xf32, #tpu.memory_space<vmem>>, vector<16x128xf32>,
    return
  }
}

</mosaic_0001>

<bundles_post_ra>
// kernel: residual_bottleneck_block.1
= control target key start
LH: loop header
LB: loop body
LE: loop exit
PB: predicated region body
PF: predicated region fallthrough
CT: control target
= control target key end

     0   :  { %vm17_vm0 = vcmask 130048   ;;  %s316_s16 = smov 1   ;;  %s317_s17 = smov 121   ;;  %vm94_vm1 = vcmask 588800   ;;  %vm123_vm2 = vcmask 64512   ;;  %s500_s0 = inlined_call_operand.vmem [shape: f32[16,128], index: 0, kind: input, shape index: {}]   ;;  %s501_s1 = inlined_call_operand.vmem [shape: f32[200,128], index: 1, kind: input, shape index: {}]   ;;  %s502_s2 = inlined_call_operand.vmem [shape: f32[16,128], index: 2, kind: output, shape index: {}]  }
   0x1   :  { %v342_v0 = vld [vmem:[%s500_s0 + $0x8] sm:$0xff]  ;;  %v347_v1 = vld [vmem:[%s500_s0] sm:$0xff]  ;;  %v16_v5 = vld [vmem:[%s501_s1 + $0x50] sm:$0xff]  ;;  %s318_s18 = smov 119   ;;  %s319_s19 = smov 7  }
   0x2   :  { %v14_v2 = vmax.f32 %v342_v0, 0.0  ;;  %v13_v3 = vmax.f32 %v347_v1, 0.0  ;;  %v15_v4 = vld [vmem:[%s501_s1 + $0x48] sm:$0xff]  ;;  %s320_s20 = smov 127   ;;  %s321_s21 = smov 120   ;;  %v373_v9 = vld [vmem:[%s501_s1 + $0x40] sm:$0xff] }
   0x3   :  { %s322_s22 = smov 9   ;;  %s323_s23 = smov 8   ;;  %v379_v14 = vld [vmem:[%s501_s1 + $0x38] sm:$0xff]  ;;  %v384_v15 = vld [vmem:[%s501_s1 + $0x30] sm:$0xff]  ;;  %v390_v18 = vld [vmem:[%s501_s1 + $0x28] sm:$0xff] }
   0x4   :  { %35 = vmatpush.msra.mxu3 %v14_v2  ;;  %v397_v22 = vld [vmem:[%s501_s1 + $0x18] sm:$0xff]  ;;  %v402_v23 = vld [vmem:[%s501_s1 + $0x10] sm:$0xff]  ;;  %v408_v26 = vld [vmem:[%s501_s1 + $0x8] sm:$0xff] }
   0x5   :  { %v414_v29 = vld [vmem:[%s501_s1] sm:$0xff]  ;;  %v83_v33 = vld [vmem:[%s501_s1 + $0x58] sm:$0xff]  ;;  %v119_v38 = vld [vmem:[%s501_s1 + $0x68] sm:$0xff] }
   0x6   :  { %36 = vmatpush.msra.mxu3 %v13_v3  ;;  %v84_v34 = vld [vmem:[%s501_s1 + $0x60] sm:$0xff]  ;;  %v120_v39 = vld [vmem:[%s501_s1 + $0x70] sm:$0xff]  ;;  %v121_v41 = vld [vmem:[%s501_s1 + $0x78] sm:$0xff] }
   0x7   :  { %300 = vmatmul.msk.f32.vlgmr.msra.gmra.mxu3 %vm17_vm0, %v15_v4  ;;  %v122_v42 = vld [vmem:[%s501_s1 + $0x80] sm:$0xff]  ;;  %v157_v50 = vld [vmem:[%s501_s1 + $0x88] sm:$0xff]  ;;  %v158_v51 = vld [vmem:[%s501_s1 + $0x90] sm:$0xff] }
  0x8a   :  { %v38_v6 = vpop.f32.mrf.mxu3 }
  0x8b   :  { %v39_v7 = vadd.f32 %v38_v6, %v16_v5 }
  0x8d   :  { %v41_v8 = vmax.f32 %v39_v7, 0.0  ;;  %v224_v7 = vld [vmem:[%s501_s1 + $0x98] sm:$0xff] }
  0x8f   :  { %57 = vrot.lane.b32.xlu2 %v41_v8, %s316_s16  ;;  %68 = vrot.lane.b32.xlu1 %v41_v8, %s317_s17 }
  0x90   :  { %78 = vrot.lane.b32.xlu0 %v41_v8, %s318_s18 }
  0x97   :  { %52 = vrot.lane.b32.xlu2 %v41_v8, %s319_s19  ;;  %63 = vrot.lane.b32.xlu1 %v41_v8, %s320_s20 }
  0x98   :  { %73 = vrot.lane.b32.xlu0 %v41_v8, %s321_s21 }
  0x9f   :  { %42 = vrot.lane.b32.xlu1 %v41_v8, %s322_s22 }
  0xa0   :  { %47 = vrot.lane.b32.xlu0 %v41_v8, %s323_s23 }
  0xe9   :  { %v58_v13 = vpop.permute.xlu2 %57 }
  0xea   :  { %v60_v25 = vmul.f32 %v397_v22, %v58_v13  ;;  %v260_v13 = vld [vmem:[%s501_s1 + $0xb0] sm:$0xff] }
  0xf1   :  { %v53_v24 = vpop.permute.xlu2 %52 }
  0xf2   :  { %v55_v28 = vmul.f32 %v402_v23, %v53_v24 }
 0x101   :  { %v69_v10 = vpop.permute.xlu1 %68 }
 0x102   :  { %v79_v11 = vpop.permute.xlu0 %78  ;;  %v71_v20 = vmul.f32 %v384_v15, %v69_v10 }
 0x103   :  { %v81_v12 = vmul.f32 %v373_v9, %v79_v11 }
 0x105   :  { %105 = vmatpush.msra.mxu1 %v81_v12  ;;  %v259_v12 = vld [vmem:[%s501_s1 + $0xa8] sm:$0xff] }
 0x109   :  { %v64_v19 = vpop.permute.xlu1 %63 }
 0x10a   :  { %v74_v16 = vpop.permute.xlu0 %73  ;;  %v66_v21 = vmul.f32 %v390_v18, %v64_v19 }
 0x10b   :  { %v76_v17 = vmul.f32 %v379_v14, %v74_v16 }
 0x10d   :  { %106 = vmatpush.msra.mxu1 %v76_v17 }
 0x10f   :  { %107 = vmatpush.msra.mxu1 %v71_v20 }
 0x111   :  { %108 = vmatpush.msra.mxu1 %v66_v21  ;;  %v43_v30 = vpop.permute.xlu1 %42 }
 0x112   :  { %v48_v27 = vpop.permute.xlu0 %47  ;;  %v45_v32 = vmul.f32 %v414_v29, %v43_v30 }
 0x113   :  { %109 = vmatpush.msra.mxu1 %v41_v8  ;;  %v50_v31 = vmul.f32 %v408_v26, %v48_v27  ;;  %v225_v8 = vld [vmem:[%s501_s1 + $0xa0] sm:$0xff] }
 0x115   :  { %110 = vmatpush.msra.mxu1 %v60_v25 }
 0x117   :  { %111 = vmatpush.msra.mxu1 %v55_v28 }
 0x119   :  { %112 = vmatpush.msra.mxu1 %v50_v31 }
 0x11b   :  { %113 = vmatpush.msra.mxu1 %v45_v32 }
 0x11c   :  { %301 = vmatmul.msk.f32.vlgmr.msra.gmra.mxu1 %vm94_vm1, %v83_v33 }
 0x199   :  { %v115_v35 = vpop.f32.mrf.mxu1 }
 0x19a   :  { %v116_v36 = vadd.f32 %v115_v35, %v84_v34 }
 0x19c   :  { %v118_v37 = vmax.f32 %v116_v36, 0.0 }
 0x19e   :  { %145 = vmatpush.msra.mxu2 %v118_v37 }
 0x19f   :  { %302 = vmatmul.msk.f32.vlgmr.msra.gmra.mxu2 %vm123_vm2, %v119_v38 }
 0x1a7   :  { %303 = vmatmul.msk.f32.gmra.mxu2 %vm123_vm2, %v120_v39 }
 0x222   :  { %v147_v40 = vpop.f32.mrf.mxu2 }
 0x223   :  { %v148_v43 = vadd.f32 %v147_v40, %v121_v41 }
 0x225   :  { %v153_v47 = vadd.f32 %v148_v43, %v13_v3 }
 0x227   :  { %v155_v49 = vmax.f32 %v153_v47, 0.0 }
 0x22a   :  { %v150_v44 = vpop.f32.mrf.mxu2 }
 0x22b   :  { %v151_v45 = vadd.f32 %v150_v44, %v122_v42 }
 0x22d   :  { %v441_v46 = vadd.f32 %v151_v45, %v14_v2 }
 0x22f   :  { %v156_v48 = vmax.f32 %v441_v46, 0.0 }
 0x231   :  { %176 = vmatpush.msrb.mxu3 %v156_v48 }
 0x233   :  { %177 = vmatpush.msrb.mxu3 %v155_v49 }
 0x234   :  { %304 = vmatmul.msk.f32.vlgmr.msrb.gmra.mxu3 %vm17_vm0, %v157_v50 }
 0x2b7   :  { %v179_v52 = vpop.f32.mrf.mxu3 }
 0x2b8   :  { %v180_v53 = vadd.f32 %v179_v52, %v158_v51 }
 0x2ba   :  { %v182_v54 = vmax.f32 %v180_v53, 0.0 }
 0x2bc   :  { %209 = vrot.lane.b32.xlu1 %v182_v54, %s317_s17  ;;  %214 = vrot.lane.b32.xlu0 %v182_v54, %s321_s21 }
 0x2bd   :  { %219 = vrot.lane.b32.xlu2 %v182_v54, %s318_s18 }
 0x2c4   :  { %193 = vrot.lane.b32.xlu1 %v182_v54, %s319_s19  ;;  %198 = vrot.lane.b32.xlu0 %v182_v54, %s316_s16 }
 0x2c5   :  { %204 = vrot.lane.b32.xlu2 %v182_v54, %s320_s20 }
 0x2cc   :  { %183 = vrot.lane.b32.xlu0 %v182_v54, %s322_s22 }
 0x2cd   :  { %188 = vrot.lane.b32.xlu2 %v182_v54, %s323_s23 }
 0x317   :  { %v220_v55 = vpop.permute.xlu2 %219 }
 0x318   :  { %v222_v56 = vmul.f32 %v220_v55, %v373_v9 }
 0x31a   :  { %245 = vmatpush.msrb.mxu2 %v222_v56 }
 0x31f   :  { %v205_v57 = vpop.permute.xlu2 %204 }
 0x320   :  { %v207_v62 = vmul.f32 %v205_v57, %v390_v18  ;;  %v262_v18 = vld [vmem:[%s501_s1 + $0xc0] sm:$0xff] }
 0x327   :  { %v189_v2 = vpop.permute.xlu2 %188 }
 0x328   :  { %v191_v4 = vmul.f32 %v189_v2, %v408_v26 }
 0x32e   :  { %v210_v58 = vpop.permute.xlu1 %209  ;;  %v215_v59 = vpop.permute.xlu0 %214 }
 0x32f   :  { %v217_v60 = vmul.f32 %v215_v59, %v379_v14  ;;  %v212_v61 = vmul.f32 %v210_v58, %v384_v15  ;;  %v261_v14 = vld [vmem:[%s501_s1 + $0xb8] sm:$0xff] }
 0x331   :  { %246 = vmatpush.msrb.mxu2 %v217_v60 }
 0x333   :  { %247 = vmatpush.msrb.mxu2 %v212_v61 }
 0x335   :  { %248 = vmatpush.msrb.mxu2 %v207_v62 }
 0x336   :  { %v194_v63 = vpop.permute.xlu1 %193  ;;  %v199_v0 = vpop.permute.xlu0 %198 }
 0x337   :  { %v201_v1 = vmul.f32 %v199_v0, %v397_v22  ;;  %249 = vmatpush.msrb.mxu2 %v182_v54  ;;  %v196_v3 = vmul.f32 %v194_v63, %v402_v23 }
 0x339   :  { %250 = vmatpush.msrb.mxu2 %v201_v1 }
 0x33b   :  { %251 = vmatpush.msrb.mxu2 %v196_v3 }
 0x33d   :  { %252 = vmatpush.msrb.mxu2 %v191_v4 }
 0x33e   :  { %v184_v5 = vpop.permute.xlu0 %183 }
 0x33f   :  { %v186_v6 = vmul.f32 %v184_v5, %v414_v29 }
 0x341   :  { %253 = vmatpush.msrb.mxu2 %v186_v6 }
 0x342   :  { %305 = vmatmul.msk.f32.vlgmr.msrb.gmra.mxu2 %vm94_vm1, %v224_v7 }
 0x3c5   :  { %v255_v9 = vpop.f32.mrf.mxu2 }
 0x3c6   :  { %v256_v10 = vadd.f32 %v255_v9, %v225_v8 }
 0x3c8   :  { %v258_v11 = vmax.f32 %v256_v10, 0.0 }
 0x3ca   :  { %284 = vmatpush.msra.mxu0 %v258_v11 }
 0x3cb   :  { %306 = vmatmul.msk.f32.vlgmr.msra.gmra.mxu0 %vm123_vm2, %v259_v12 }
 0x3d3   :  { %307 = vmatmul.msk.f32.gmra.mxu0 %vm123_vm2, %v260_v13 }
 0x448   :  { %v286_v15 = vpop.f32.mrf.mxu0 }
 0x449   :  { %v287_v16 = vadd.f32 %v286_v15, %v261_v14 }
 0x44b   :  { %v292_v17 = vadd.f32 %v287_v16, %v155_v49 }
 0x44d   :  { %294 = vst [vmem:[%s502_s2] sm:$0xff] %v292_v17 }
 0x450   :  { %v289_v19 = vpop.f32.mrf.mxu0 }
 0x451   :  { %v290_v20 = vadd.f32 %v289_v19, %v262_v18 }
 0x453   :  { %v293_v21 = vadd.f32 %v290_v20, %v156_v48 }
 0x455   :  { %295 = vst [vmem:[%s502_s2 + $0x8] sm:$0xff] %v293_v21 }

</bundles_post_ra>
